<compile_context>
chip_gen: v7x
topology: tpu7x:2x2x1
jax: 0.10.0
libtpu: 0.0.40
codegen_flags: <defaults>
</compile_context>

<pallas_src>
import functools

import jax
import jax.numpy as jnp
from jax.experimental import pallas as pl
from jax.experimental.pallas import tpu as pltpu

_BN_EPS = 1e-5


def d_model_kernel(x_ref, w1_ref, b1_ref, gamma_ref, beta_ref, w2_ref, b2_ref,
                   o_ref, h_ref, *, inv_batch, valid_batch, tile_b, need_mask,
                   mm_dtype):
    t = pl.program_id(0)
    nt = pl.num_programs(0)

    # ---- Linear 1 + ReLU --------------------------------------------------
    # x tile stays (TB, E) (no host transpose); contract the E (lane) axes of
    # w1 (H, E) and x (TB, E) -> h (H, TB), batch on the lane axis.
    x = x_ref[...]
    if mm_dtype != jnp.float32:
        x = x.astype(mm_dtype)          # w1 was cast once in the wrapper
    h = jax.lax.dot_general(
        w1_ref[...], x,
        dimension_numbers=(((1,), (1,)), ((), ())),
        preferred_element_type=jnp.float32)                        # (H, TB)
    h = jnp.maximum(h + b1_ref[...], 0.0)

    # Single pass: stash this tile into the persistent VMEM h buffer
    # (no phase-1 recompute, no second x DMA).
    h_ref[t] = h

    # ---- Finalize: batch stats + BN + Linear-2 + Sigmoid -------------------
    @pl.when(t == nt - 1)
    def _finalize():
        hb = h_ref[...]                                            # (nt, H, TB)

        if need_mask:
            tile_ids = jax.lax.broadcasted_iota(jnp.int32, hb.shape, 0)
            lane_ids = jax.lax.broadcasted_iota(jnp.int32, hb.shape, 2)
            valid = (tile_ids * tile_b + lane_ids) < valid_batch
            hz = jnp.where(valid, hb, 0.0)
        else:
            hz = hb

        # Two-pass (centered) batch statistics: h is resident in VMEM, so the
        # second pass is cheap and avoids E[h^2] - E[h]^2 cancellation.
        mean = jnp.sum(jnp.sum(hz, axis=0, keepdims=True),
                       axis=2, keepdims=True) * inv_batch          # (1, H, 1)
        centered = hb - mean
        if need_mask:
            centered = jnp.where(valid, centered, 0.0)
        var = jnp.sum(jnp.sum(centered * centered, axis=0, keepdims=True),
                      axis=2, keepdims=True) * inv_batch           # (1, H, 1)

        # Fold BatchNorm affine into Linear-2 (VPU + one sublane reduce; no
        # N=1 MXU matmul):
        #   scale = gamma * rsqrt(var + eps);  shift = beta - mean * scale
        #   out   = sum_h (w2*scale)[h] * h[h,:] + (sum_h w2[h]*shift[h] + b2)
        scale = gamma_ref[...] * jax.lax.rsqrt(var + _BN_EPS)      # (1, H, 1)
        shift = beta_ref[...] - mean * scale                       # (1, H, 1)
        w2 = w2_ref[...]                                           # (H, 1)
        w2_scaled = w2 * scale                                     # (1, H, 1)
        bias = jnp.sum(shift * w2, axis=1, keepdims=True) + b2_ref[0]  # (1,1,1)

        z = jnp.sum(hb * w2_scaled, axis=1, keepdims=True) + bias  # (nt, 1, TB)
        # sigmoid(x) = 0.5 * tanh(0.5 x) + 0.5  -> EUP slot.
        o_ref[...] = 0.5 * jnp.tanh(0.5 * z) + 0.5


def _plan_batch(B):
    """Return (tile_B, padded_B, num_tiles).  Lane-dense 512-wide tiles for
    large B (padded batch masked out of the stats); one full-array tile
    otherwise (block_shape == array dims is always legal)."""
    if B <= 1024:
        return B, B, 1
    TB = 512
    num_tiles = pl.cdiv(B, TB)
    return TB, TB * num_tiles, num_tiles


def _vmem_capacity_bytes():
    try:
        return int(pltpu.get_tpu_info().vmem_capacity_bytes)
    except Exception:
        return 64 * 1024 * 1024       # conservative (v7x per-core VMEM)


def _vmem_limit_bytes(TB, E, H, num_tiles, mm_dtype):
    w1_bytes = 2 if mm_dtype == jnp.bfloat16 else 4
    needed = (
        2 * TB * E * 4                # x tiles (double-buffered, f32)
        + 2 * H * E * w1_bytes        # w1 (constant index, still double-buffered)
        + 8 * H * 4                   # b1 / gamma / beta / w2 columns
        + 2 * num_tiles * TB * 4      # output slab
        + num_tiles * H * TB * 4      # persistent h scratch
        + 4 * H * TB * 4              # in-flight h + temporaries
    )
    cap = _vmem_capacity_bytes()
    return int(min(max(2 * needed, 32 * 1024 * 1024), int(0.85 * cap)))


def d_model_forward(x, w1, b1, gamma, beta, w2, b2, *, mm_dtype=jnp.float32):
    """x: (B, E) f32.  Params in native PyTorch layout:
       w1 (H, E), b1 (H,), gamma (H,), beta (H,), w2 (1, H), b2 (1,).
       mm_dtype=jnp.bfloat16 enables the MXU-native-rate matmul path."""
    B, E = x.shape
    H = w1.shape[0]

    TB, B_pad, num_tiles = _plan_batch(B)
    if B_pad != B:
        x = jnp.pad(x, ((0, B_pad - B), (0, 0)))   # padded rows masked out of stats

    w1c = w1.astype(mm_dtype)                      # cast the resident operand once
    b1c = b1.reshape(H, 1).astype(jnp.float32)
    gammac = gamma.reshape(H, 1).astype(jnp.float32)
    betac = beta.reshape(H, 1).astype(jnp.float32)
    w2c = w2.reshape(H, 1).astype(jnp.float32)     # second Linear weight as a column
    b2s = b2.reshape(1).astype(jnp.float32)        # scalar, lives in SMEM

    kernel = functools.partial(
        d_model_kernel,
        inv_batch=1.0 / float(B),
        valid_batch=B,
        tile_b=TB,
        need_mask=(B_pad != B),
        mm_dtype=mm_dtype,
    )

    out = pl.pallas_call(
        kernel,
        out_shape=jax.ShapeDtypeStruct((num_tiles, 1, TB), jnp.float32),
        grid=(num_tiles,),
        in_specs=[
            pl.BlockSpec((TB, E), lambda t: (t, 0)),           # x tile (pipelined)
            # Constant-index operands stay resident. (On v7x, single-buffering
            # them via pipeline_mode=pl.Buffered(1) would halve their VMEM.)
            pl.BlockSpec((H, E), lambda t: (0, 0)),            # w1
            pl.BlockSpec((H, 1), lambda t: (0, 0)),            # b1
            pl.BlockSpec((H, 1), lambda t: (0, 0)),            # gamma
            pl.BlockSpec((H, 1), lambda t: (0, 0)),            # beta
            pl.BlockSpec((H, 1), lambda t: (0, 0)),            # w2 column
            pl.BlockSpec(memory_space=pltpu.MemorySpace.SMEM),  # b2 scalar
        ],
        # Constant index_map => the whole lane-dense output slab stays
        # VMEM-resident across the grid and is written once at finalize.
        out_specs=pl.BlockSpec((num_tiles, 1, TB), lambda t: (0, 0, 0)),
        scratch_shapes=[
            pltpu.VMEM((num_tiles, H, TB), jnp.float32),       # persistent h
        ],
        compiler_params=pltpu.CompilerParams(
            # Stats/h accumulate across batch tiles -> sequential axis.
            dimension_semantics=("arbitrary",),
            vmem_limit_bytes=_vmem_limit_bytes(TB, E, H, num_tiles, mm_dtype),
        ),
    )(x, w1c, b1c, gammac, betac, w2c, b2s)

    # Lane-dense (num_tiles, 1, TB) result -> (B, 1) column (layout plumbing).
    return out.reshape(B_pad)[:B].reshape(B, 1)


def d_model_reference(x, w1, b1, gamma, beta, w2, b2):
    """Pure-JAX reference with the same train-mode BatchNorm semantics."""
    h = jnp.maximum(x @ w1.T + b1, 0.0)
    mean = jnp.mean(h, axis=0, keepdims=True)
    var = jnp.mean((h - mean) ** 2, axis=0, keepdims=True)      # biased (train mode)
    hn = (h - mean) * jax.lax.rsqrt(var + _BN_EPS) * gamma + beta
    z = hn @ w2.T + b2
    return jax.nn.sigmoid(z)


def init_params(key, embedding_dim):
    """Mirror nn.Linear default init (U[-1/sqrt(fan_in), 1/sqrt(fan_in)]) and
    nn.BatchNorm1d defaults (gamma=1, beta=0). Native PyTorch layouts."""
    hid = embedding_dim // 2
    k1, k2, k3, k4 = jax.random.split(key, 4)

    lim1 = 1.0 / jnp.sqrt(embedding_dim)
    w1 = jax.random.uniform(k1, (hid, embedding_dim), jnp.float32, -lim1, lim1)
    b1 = jax.random.uniform(k2, (hid,), jnp.float32, -lim1, lim1)

    lim2 = 1.0 / jnp.sqrt(hid)
    w2 = jax.random.uniform(k3, (1, hid), jnp.float32, -lim2, lim2)
    b2 = jax.random.uniform(k4, (1,), jnp.float32, -lim2, lim2)

    return dict(
        w1=w1, b1=b1,
        gamma=jnp.ones((hid,), jnp.float32),
        beta=jnp.zeros((hid,), jnp.float32),
        w2=w2, b2=b2,
    )


if __name__ == "__main__":
    B = 8                 # batch size
    EMBEDDING_DIM = 32    # embedding_dim -> hid = 16

    key = jax.random.PRNGKey(0)
    kx, kp = jax.random.split(key)

    x = jax.random.normal(kx, (B, EMBEDDING_DIM), jnp.float32)
    params = init_params(kp, EMBEDDING_DIM)

    ref = d_model_reference(x, **params)

    # f32 path.
    out = jax.block_until_ready(d_model_forward(x, **params))
    assert out.shape == (B, 1)
    assert bool(jnp.all((out >= 0.0) & (out <= 1.0)))
    assert bool(jnp.allclose(out, ref, atol=5e-3, rtol=0.0))

    # bf16 MXU path (throughput option) — looser tolerance.
    out_bf16 = jax.block_until_ready(
        d_model_forward(x, **params, mm_dtype=jnp.bfloat16))
    assert out_bf16.shape == (B, 1)
    assert bool(jnp.allclose(out_bf16, ref, atol=3e-2, rtol=0.0))

    print("KERNEL_OK")
</pallas_src>

<mosaic_0001>
module attributes {stable_mosaic.version = 11 : i64} {
  func.func @d_model_kernel(%arg0: i32, %arg1: memref<8x32xf32, #tpu.memory_space<vmem>>, %arg2: memref<16x32xf32, #tpu.memory_space<vmem>>, %arg3: memref<16x1xf32, #tpu.memory_space<vmem>>, %arg4: memref<16x1xf32, #tpu.memory_space<vmem>>, %arg5: memref<16x1xf32, #tpu.memory_space<vmem>>, %arg6: memref<16x1xf32, #tpu.memory_space<vmem>>, %arg7: memref<1xf32, #tpu.memory_space<smem>>, %arg8: memref<1x1x8xf32, #tpu.memory_space<vmem>>, %arg9: memref<1x16x8xf32, #tpu.memory_space<vmem>>) attributes {dimension_semantics = [#tpu.dimension_semantics<arbitrary>], iteration_bounds = array<i64: 1>, scalar_prefetch = 0 : i64, scratch_operands = 1 : i64, tpu.core_type = #tpu.core_type<tc>, window_params = [{transform_indices = @transform_0, window_bounds = array<i64: 8, 32>}, {pipeline_mode = #tpu.pipeline_mode<synchronous>, transform_indices = @transform_1, window_bounds = array<i64: 16, 32>}, {pipeline_mode = #tpu.pipeline_mode<synchronous>, transform_indices = @transform_2, window_bounds = array<i64: 16, 1>}, {pipeline_mode = #tpu.pipeline_mode<synchronous>, transform_indices = @transform_3, window_bounds = array<i64: 16, 1>}, {pipeline_mode = #tpu.pipeline_mode<synchronous>, transform_indices = @transform_4, window_bounds = array<i64: 16, 1>}, {pipeline_mode = #tpu.pipeline_mode<synchronous>, transform_indices = @transform_5, window_bounds = array<i64: 16, 1>}, {transform_indices = @transform_6, window_bounds = array<i64: 1>}, {pipeline_mode = #tpu.pipeline_mode<synchronous>, transform_indices = @transform_7, window_bounds = array<i64: 1, 1, 8>}]} {
    %c0 = arith.constant 0 : index
    %c0_0 = arith.constant 0 : index
    %0 = vector.load %arg1[%c0, %c0_0] : memref<8x32xf32, #tpu.memory_space<vmem>>, vector<8x32xf32>
    %c0_1 = arith.constant 0 : index
    %c0_2 = arith.constant 0 : index
    %1 = vector.load %arg2[%c0_1, %c0_2] : memref<16x32xf32, #tpu.memory_space<vmem>>, vector<16x32xf32>
    %cst = arith.constant dense<0.000000e+00> : vector<16x8xf32>
    %2 = tpu.matmul %1, %0, %cst {dimension_numbers = #tpu.dot_dimension_numbers<[1], [1], [0], [0], [0, 0, 1, 0], [], []>} : vector<16x32xf32>, vector<8x32xf32>, vector<16x8xf32> -> vector<16x8xf32>
    %c0_3 = arith.constant 0 : index
    %c0_4 = arith.constant 0 : index
    %3 = vector.load %arg3[%c0_3, %c0_4] : memref<16x1xf32, #tpu.memory_space<vmem>>, vector<16x1xf32>
    %4 = vector.broadcast %3 : vector<16x1xf32> to vector<16x8xf32>
    %5 = arith.addf %2, %4 : vector<16x8xf32>
    %cst_5 = arith.constant 0.000000e+00 : f32
    %6 = vector.broadcast %cst_5 : f32 to vector<16x8xf32>
    %7 = arith.maximumf %5, %6 : vector<16x8xf32>
    %8 = arith.index_cast %arg0 : i32 to index
    %c0_6 = arith.constant 0 : index
    %c0_7 = arith.constant 0 : index
    %9 = vector.load %arg9[%8, %c0_6, %c0_7] : memref<1x16x8xf32, #tpu.memory_space<vmem>>, vector<1x16x8xf32>
    %10 = vector.shape_cast %9 : vector<1x16x8xf32> to vector<16x8xf32>
    %11 = vector.shape_cast %7 : vector<16x8xf32> to vector<1x16x8xf32>
    tpu.vector_store %arg9[%8, %c0_6, %c0_7], %11 {strides = array<i32>} : memref<1x16x8xf32, #tpu.memory_space<vmem>>, vector<1x16x8xf32>,
    %c0_i32 = arith.constant 0 : i32
    %12 = arith.cmpi eq, %arg0, %c0_i32 : i32
    %13 = arith.extui %12 : i1 to i32
    %c0_i32_8 = arith.constant 0 : i32
    %14 = arith.cmpi ne, %13, %c0_i32_8 : i32
    scf.if %14 {
      %c0_9 = arith.constant 0 : index
      %c0_10 = arith.constant 0 : index
      %c0_11 = arith.constant 0 : index
      %15 = vector.load %arg9[%c0_9, %c0_10, %c0_11] : memref<1x16x8xf32, #tpu.memory_space<vmem>>, vector<1x16x8xf32>
      %cst_12 = arith.constant dense<0.000000e+00> : vector<16x8xf32>
      %16 = vector.multi_reduction <add>, %15, %cst_12 [0] : vector<1x16x8xf32> to vector<16x8xf32>
      %17 = vector.shape_cast %16 : vector<16x8xf32> to vector<1x16x8xf32>
      %cst_13 = arith.constant dense<0.000000e+00> : vector<1x16xf32>
      %18 = vector.multi_reduction <add>, %17, %cst_13 [2] : vector<1x16x8xf32> to vector<1x16xf32>
      %19 = vector.shape_cast %18 : vector<1x16xf32> to vector<1x16x1xf32>
      %cst_14 = arith.constant 1.250000e-01 : f32
      %20 = vector.broadcast %cst_14 : f32 to vector<1x16x1xf32>
      %21 = arith.mulf %19, %20 : vector<1x16x1xf32>
      %22 = vector.broadcast %21 : vector<1x16x1xf32> to vector<1x16x8xf32>
      %23 = arith.subf %15, %22 : vector<1x16x8xf32>
      %24 = arith.mulf %23, %23 : vector<1x16x8xf32>
      %cst_15 = arith.constant dense<0.000000e+00> : vector<16x8xf32>
      %25 = vector.multi_reduction <add>, %24, %cst_15 [0] : vector<1x16x8xf32> to vector<16x8xf32>
      %26 = vector.shape_cast %25 : vector<16x8xf32> to vector<1x16x8xf32>
      %cst_16 = arith.constant dense<0.000000e+00> : vector<1x16xf32>
      %27 = vector.multi_reduction <add>, %26, %cst_16 [2] : vector<1x16x8xf32> to vector<1x16xf32>
      %28 = vector.shape_cast %27 : vector<1x16xf32> to vector<1x16x1xf32>
      %cst_17 = arith.constant 1.250000e-01 : f32
      %29 = vector.broadcast %cst_17 : f32 to vector<1x16x1xf32>
      %30 = arith.mulf %28, %29 : vector<1x16x1xf32>
      %c0_18 = arith.constant 0 : index
      %c0_19 = arith.constant 0 : index
      %31 = vector.load %arg4[%c0_18, %c0_19] : memref<16x1xf32, #tpu.memory_space<vmem>>, vector<16x1xf32>
      %cst_20 = arith.constant 9.99999974E-6 : f32
      %32 = vector.broadcast %cst_20 : f32 to vector<1x16x1xf32>
      %33 = arith.addf %30, %32 : vector<1x16x1xf32>
      %34 = math.rsqrt %33 : vector<1x16x1xf32>
      %35 = vector.shape_cast %31 : vector<16x1xf32> to vector<1x16x1xf32>
      %36 = arith.mulf %35, %34 : vector<1x16x1xf32>
      %c0_21 = arith.constant 0 : index
      %c0_22 = arith.constant 0 : index
      %37 = vector.load %arg5[%c0_21, %c0_22] : memref<16x1xf32, #tpu.memory_space<vmem>>, vector<16x1xf32>
      %38 = arith.mulf %21, %36 : vector<1x16x1xf32>
      %39 = vector.shape_cast %37 : vector<16x1xf32> to vector<1x16x1xf32>
      %40 = arith.subf %39, %38 : vector<1x16x1xf32>
      %c0_23 = arith.constant 0 : index
      %c0_24 = arith.constant 0 : index
      %41 = vector.load %arg6[%c0_23, %c0_24] : memref<16x1xf32, #tpu.memory_space<vmem>>, vector<16x1xf32>
      %42 = vector.shape_cast %41 : vector<16x1xf32> to vector<1x16x1xf32>
      %43 = arith.mulf %42, %36 : vector<1x16x1xf32>
      %44 = vector.shape_cast %41 : vector<16x1xf32> to vector<1x16x1xf32>
      %45 = arith.mulf %40, %44 : vector<1x16x1xf32>
      %cst_25 = arith.constant dense<0.000000e+00> : vector<1x1xf32>
      %46 = vector.multi_reduction <add>, %45, %cst_25 [1] : vector<1x16x1xf32> to vector<1x1xf32>
      %47 = vector.shape_cast %46 : vector<1x1xf32> to vector<1x1x1xf32>
      %c0_26 = arith.constant 0 : index
      %48 = memref.load %arg7[%c0_26] : memref<1xf32, #tpu.memory_space<smem>>
      %49 = vector.broadcast %48 : f32 to vector<1x1x1xf32>
      %50 = arith.addf %47, %49 : vector<1x1x1xf32>
      %51 = vector.broadcast %43 : vector<1x16x1xf32> to vector<1x16x8xf32>
      %52 = arith.mulf %15, %51 : vector<1x16x8xf32>
      %cst_27 = arith.constant dense<0.000000e+00> : vector<1x8xf32>
      %53 = vector.multi_reduction <add>, %52, %cst_27 [1] : vector<1x16x8xf32> to vector<1x8xf32>
      %54 = vector.shape_cast %53 : vector<1x8xf32> to vector<1x1x8xf32>
      %55 = vector.broadcast %50 : vector<1x1x1xf32> to vector<1x1x8xf32>
      %56 = arith.addf %54, %55 : vector<1x1x8xf32>
      %cst_28 = arith.constant 5.000000e-01 : f32
      %57 = vector.broadcast %cst_28 : f32 to vector<1x1x8xf32>
      %58 = arith.mulf %57, %56 : vector<1x1x8xf32>
      %59 = math.tanh %58 : vector<1x1x8xf32>
      %cst_29 = arith.constant 5.000000e-01 : f32
      %60 = vector.broadcast %cst_29 : f32 to vector<1x1x8xf32>
      %61 = arith.mulf %60, %59 : vector<1x1x8xf32>
      %cst_30 = arith.constant 5.000000e-01 : f32
      %62 = vector.broadcast %cst_30 : f32 to vector<1x1x8xf32>
      %63 = arith.addf %61, %62 : vector<1x1x8xf32>
      %c0_31 = arith.constant 0 : index
      %c0_32 = arith.constant 0 : index
      %c0_33 = arith.constant 0 : index
      %64 = vector.load %arg8[%c0_31, %c0_32, %c0_33] : memref<1x1x8xf32, #tpu.memory_space<vmem>>, vector<1x1x8xf32>
      tpu.vector_store %arg8[%c0_31, %c0_32, %c0_33], %63 {strides = array<i32>} : memref<1x1x8xf32, #tpu.memory_space<vmem>>, vector<1x1x8xf32>,
    } else {
    }
    return
  }
  func.func @transform_0(%arg0: i32) -> (i32, i32) {
    %c0_i32 = arith.constant 0 : i32
    %c0_i32_0 = arith.constant 0 : i32
    return %arg0, %c0_i32 : i32, i32
  }
  func.func @transform_1(%arg0: i32) -> (i32, i32) {
    %c0_i32 = arith.constant 0 : i32
    %c0_i32_0 = arith.constant 0 : i32
    %c0_i32_1 = arith.constant 0 : i32
    return %c0_i32, %c0_i32_0 : i32, i32
  }
  func.func @transform_2(%arg0: i32) -> (i32, i32) {
    %c0_i32 = arith.constant 0 : i32
    %c0_i32_0 = arith.constant 0 : i32
    %c0_i32_1 = arith.constant 0 : i32
    return %c0_i32, %c0_i32_0 : i32, i32
  }
  func.func @transform_3(%arg0: i32) -> (i32, i32) {
    %c0_i32 = arith.constant 0 : i32
    %c0_i32_0 = arith.constant 0 : i32
    %c0_i32_1 = arith.constant 0 : i32
    return %c0_i32, %c0_i32_0 : i32, i32
  }
  func.func @transform_4(%arg0: i32) -> (i32, i32) {
    %c0_i32 = arith.constant 0 : i32
    %c0_i32_0 = arith.constant 0 : i32
    %c0_i32_1 = arith.constant 0 : i32
    return %c0_i32, %c0_i32_0 : i32, i32
  }
  func.func @transform_5(%arg0: i32) -> (i32, i32) {
    %c0_i32 = arith.constant 0 : i32
    %c0_i32_0 = arith.constant 0 : i32
    %c0_i32_1 = arith.constant 0 : i32
    return %c0_i32, %c0_i32_0 : i32, i32
  }
  func.func @transform_6(%arg0: i32) -> i32 {
    %c0_i32 = arith.constant 0 : i32
    %c0_i32_0 = arith.constant 0 : i32
    return %c0_i32 : i32
  }
  func.func @transform_7(%arg0: i32) -> (i32, i32, i32) {
    %c0_i32 = arith.constant 0 : i32
    %c0_i32_0 = arith.constant 0 : i32
    %c0_i32_1 = arith.constant 0 : i32
    %c0_i32_2 = arith.constant 0 : i32
    return %c0_i32, %c0_i32_0, %c0_i32_1 : i32, i32, i32
  }
}

</mosaic_0001>

<bundles_post_ra>
// kernel: tpu_custom_call.1
= control target key start
LH: loop header
LB: loop body
LE: loop exit
PB: predicated region body
PF: predicated region fallthrough
CT: control target
= control target key end

     0   :  { %vm43_vm0 = vcmask 261120   ;;  %s388_s0 = inlined_call_operand.vmem [shape: f32[8,32], index: 0, kind: input, shape index: {}]   ;;  %s389_s1 = inlined_call_operand.vmem [shape: f32[16,32], index: 1, kind: input, shape index: {}]   ;;  %s390_s2 = inlined_call_operand.vmem [shape: f32[16,1], index: 2, kind: input, shape index: {}]   ;;  %s391_s3 = inlined_call_operand.vmem [shape: f32[16,1], index: 3, kind: input, shape index: {}]   ;;  %s392_s4 = inlined_call_operand.vmem [shape: f32[16,1], index: 4, kind: input, shape index: {}]   ;;  %s393_s5 = inlined_call_operand.vmem [shape: f32[16,1], index: 5, kind: input, shape index: {}]   ;;  %s394_s6 = inlined_call_operand.<no memory space> [shape: f32[1], index: 6, kind: input, shape index: {}]   ;;  %s395_s7 = inlined_call_operand.hbm [shape: f32[1,1,8], index: 7, kind: output, shape index: {}]  }
   0x1   :  { %v28_v0 = vld [vmem:[%s388_s0] sm:$0xff] }
   0x2   :  { %v29_v1 = vld [vmem:[%s389_s1] sm:$0xff]  ;;  %251 = vmatprep.subr.msk.mxu0 %vm43_vm0, %v28_v0 }
   0x3   :  { %253 = vmatprep.mubr.msk.f32.mxu0 %vm43_vm0, %v29_v1  ;;  %v31_v2 = vld [vmem:[%s390_s2] sm:$0xff] }
   0x4   :  { %13 = vsyncpa [#allocation5], 0  ;;  %252 = vmatpush3.xpose.msk.msra.mxu0 %vm43_vm0, %v28_v0  ;;  %v30_v3 = vld [vmem:[%s389_s1 + $0x8] sm:$0xff]  ;;  %v290_v4 = vmov 0   ;;  %vm132_vm1 = vcmask 64512   ;;  %v165_v34 = vld [vmem:[%s391_s3] sm:$0xff]  ;;  %v196_v60 = vstv %s394_s6 }
   0x5   :  { %258 = vset.pattern.permute.xlu0 %v290_v4  ;;  %259 = vset.pattern.permute.xlu1 %v290_v4  ;;  %v32_v5 = vld [vmem:[%s390_s2 + $0x8] sm:$0xff]  ;;  %v179_v36 = vld [vmem:[%s393_s5] sm:$0xff]  ;;  %vm185_vm2 = vcmask 7168   ;;  %vm229_vm3 = vcmask 57344  }
   0x6   :  { %35 = vperm.xlu0 %258, %v31_v2   ;;  %v173_v38 = vld [vmem:[%s392_s4] sm:$0xff]  ;;  %v166_v39 = vld [vmem:[%s391_s3 + $0x8] sm:$0xff] }
   0x7   :  { %254 = vmatmul.mubr.msk.f32.vlgmr.msra.gmra.mrb[0].mxu0 %vm43_vm0, %v30_v3  ;;  %v180_v43 = vld [vmem:[%s393_s5 + $0x8] sm:$0xff] }
   0x8   :  { %v174_v46 = vld [vmem:[%s392_s4 + $0x8] sm:$0xff]  ;;  %s291_s4 = smov [#allocation4]  }
   0x9   :  { %s237_s6 = sshll.u32 %s291_s4, 4  ;;  %s238_s6 = int_to_ptr.vmem [resolvable:$true] %s237_s6 }
   0xa   :  { %40 = vperm.xlu0 %258, %v32_v5   ;;  %s266_s20 = scalar_lea.vmem %s238_s6, 16  ;;  %s270_s21 = scalar_lea.vmem %s238_s6, 32 }
   0xb   :  { %p267_p0 = scmp.ne.s32.totalorder %s238_s6, %s266_s20  ;;  %p271_p1 = scmp.lt.s32.totalorder %s238_s6, %s238_s6 }
   0xc   :  { %p272_p2 = scmp.lt.s32.totalorder %s270_s21, %s266_s20 }
   0xe   :  { %p273_p3 = por %p272_p2, %p271_p1 }
  0x10   :  { %p274_p4 = pnand %p273_p3, %p267_p0 }
  0x85   :  { %v36_v6 = vpop.permute.xlu0 %35 }
  0x89   :  { %v41_v7 = vpop.permute.xlu0 %40 }
  0xda   :  { %v255_v8 = vpop.f32.mrb[0].mxu0 }
  0xdb   :  { %v125_v9 = vadd.f32 %v255_v8, %v41_v7  ;;  %v119_v10 = vpop.f32.mrb[1].mxu0 }
  0xdc   :  { %v120_v11 = vadd.f32 %v119_v10, %v36_v6 }
  0xdd   :  { %v129_v12 = vmax.f32 %v125_v9, 0.0 }
  0xde   :  { %v128_v13 = vmax.f32 %v120_v11, 0.0 }
  0xdf   :  { %134 = vst.msk [vmem:[#allocation2 + $0x8] sm:$0xff] %vm132_vm1, %v129_v12 }
  0xe0   :  { %133 = vst.msk [vmem:[#allocation2] sm:$0xff] %vm132_vm1, %v128_v13 }
  0xe6   :  { %v140_v16 = vld [vmem:[#allocation2 + $0x8] sm:$0xff] }
  0xe7   :  { %v139_v14 = vld [vmem:[#allocation2] sm:$0xff]  ;;  %v146_v17 = vsel %vm132_vm1, %v140_v16, 0.0 }
  0xe8   :  { %v143_v15 = vsel %vm132_vm1, %v139_v14, 0.0 }
  0xe9   :  { %144 = vadd.xlane.f32.xlu1 %v143_v15 }
  0xed   :  { %147 = vadd.xlane.f32.xlu1 %v146_v17 }
 0x176   :  { %v145_v18 = vpop.xlane.xlu1 %144 }
 0x177   :  { %v149_v19 = vmul.f32 0.125, %v145_v18 }
 0x179   :  { %v151_v20 = vsub.f32 %v139_v14, %v149_v19 }
 0x17a   :  { %v148_v21 = vpop.xlane.xlu1 %147 }
 0x17b   :  { %v150_v22 = vmul.f32 0.125, %v148_v21  ;;  %v153_v23 = vmul.f32 %v151_v20, %v151_v20 }
 0x17d   :  { %v152_v24 = vsub.f32 %v140_v16, %v150_v22  ;;  %v157_v25 = vsel %vm132_vm1, %v153_v23, 0.0 }
 0x17e   :  { %158 = vadd.xlane.f32.xlu0 %v157_v25 }
 0x17f   :  { %v154_v26 = vmul.f32 %v152_v24, %v152_v24 }
 0x181   :  { %v160_v27 = vsel %vm132_vm1, %v154_v26, 0.0 }
 0x182   :  { %161 = vadd.xlane.f32.xlu1 %v160_v27 }
 0x20b   :  { %v159_v28 = vpop.xlane.xlu0 %158 }
 0x20c   :  { %v163_v29 = vmul.f32 0.125, %v159_v28 }
 0x20e   :  { %v167_v30 = vadd.f32 1e-05, %v163_v29 }
 0x20f   :  { %v162_v31 = vpop.xlane.xlu1 %161 }
 0x210   :  { %260 = vrsqrt.f32 %v167_v30  ;;  %v164_v32 = vmul.f32 0.125, %v162_v31 }
 0x212   :  { %v168_v33 = vadd.f32 1e-05, %v164_v32 }
 0x214   :  { %262 = vrsqrt.f32 %v168_v33 }
 0x21a   :  { %v261_v35 = vpop.eup %260 }
 0x21b   :  { %v171_v37 = vmul.f32 %v261_v35, %v165_v34 }
 0x21d   :  { %v175_v40 = vmul.f32 %v171_v37, %v149_v19  ;;  %v181_v41 = vmul.f32 %v179_v36, %v171_v37 }
 0x21e   :  { %v263_v42 = vpop.eup %262 }
 0x21f   :  { %v177_v44 = vsub.f32 %v173_v38, %v175_v40  ;;  %200 = vperm.xlu1 %259, %v181_v41   ;;  %v172_v45 = vmul.f32 %v263_v42, %v166_v39 }
 0x221   :  { %v182_v47 = vmul.f32 %v180_v43, %v172_v45  ;;  %v176_v48 = vmul.f32 %v172_v45, %v150_v22  ;;  %v183_v49 = vmul.f32 %v179_v36, %v177_v44 }
 0x223   :  { %205 = vperm.xlu1 %259, %v182_v47   ;;  %v178_v50 = vsub.f32 %v174_v46, %v176_v48  ;;  %v186_v52 = vsel %vm185_vm2, %v183_v49, 0.0 }
 0x225   :  { %v184_v51 = vmul.f32 %v180_v43, %v178_v50 }
 0x227   :  { %v187_v53 = vsel %vm185_vm2, %v184_v51, 0.0 }
 0x228   :  { %v188_v54 = vadd.f32 %v187_v53, %v186_v52 }
 0x22a   :  { %v189_v55 = vrot.slane %v188_v54, 4 }
 0x22c   :  { %v190_v56 = vadd.f32 %v189_v55, %v188_v54 }
 0x22e   :  { %v191_v57 = vrot.slane %v190_v56, 2 }
 0x230   :  { %v192_v58 = vadd.f32 %v191_v57, %v190_v56 }
 0x232   :  { %v193_v59 = vrot.slane %v192_v58, 1 }
 0x234   :  { %v194_v61 = vadd.f32 %v193_v59, %v192_v58 }
 0x236   :  { %v197_v62 = vadd.f32 %v196_v60, %v194_v61 }
 0x238   :  { %221 = vperm.xlu1 %259, %v197_v62  }
 0x29e   :  { %v201_v63 = vpop.permute.xlu1 %200 }
 0x29f   :  { %v208_v0 = vmul.f32 %v201_v63, %v139_v14 }
 0x2a1   :  { %v210_v3 = vsel %vm132_vm1, %v208_v0, 0.0 }
 0x2a2   :  { %v206_v1 = vpop.permute.xlu1 %205 }
 0x2a3   :  { %v209_v2 = vmul.f32 %v206_v1, %v140_v16 }
 0x2a5   :  { %v211_v4 = vsel %vm132_vm1, %v209_v2, 0.0 }
 0x2a6   :  { %v212_v5 = vadd.f32 %v211_v4, %v210_v3 }
 0x2a8   :  { %v213_v6 = vrot.slane %v212_v5, 4 }
 0x2aa   :  { %v214_v7 = vadd.f32 %v213_v6, %v212_v5 }
 0x2ac   :  { %v215_v8 = vrot.slane %v214_v7, 2 }
 0x2ae   :  { %v216_v9 = vadd.f32 %v215_v8, %v214_v7 }
 0x2b0   :  { %v217_v10 = vrot.slane %v216_v9, 1 }
 0x2b2   :  { %v218_v11 = vadd.f32 %v217_v10, %v216_v9 }
 0x2b7   :  { %v222_v12 = vpop.permute.xlu1 %221 }
 0x2b8   :  { %v224_v13 = vadd.f32 %v222_v12, %v218_v11 }
 0x2ba   :  { %v225_v15 = vmul.f32 0.5, %v224_v13 }
 0x2bc   :  { %264 = vtanh.f32 %v225_v15 }
 0x2c6   :  { %v265_v17 = vpop.eup %264 }
 0x2c7   :  { %v227_v14 = vmul.f32 0.5, %v265_v17 }
 0x2c9   :  { %v228_v16 = vadd.f32 0.5, %v227_v14 }
 0x2cb   :  { %230 = vst.msk [vmem:[#allocation4] sm:$0x1] %vm229_vm3, %v228_v16 }
 0x2cc   :  { %277 = shalt.err (!%p274_p4)
}
 0x2cd   :  { %s278_s24 = scalar_lea.hbm %s395_s7, 16 }
 0x2ce   :  { %p279_p5 = scmp.ne.s32.totalorder %s395_s7, %s278_s24  ;;  %p282_p6 = scmp.lt.u32.totalorder %s278_s24, %s395_s7 }
 0x2d0   :  { %p284_p7 = pnand %p282_p6, %p279_p5 }
 0x2d2   :  { %287 = shalt.err (!%p284_p7)
}
 0x2d3   :  { %240 = dma.vmem_to_hbm [thread:$0]  %s238_s6, 16, %s395_s7, [#allocation5]  }
 0x2d4   :  { %288 = dma.done.wait [#allocation5], 16  }
 0x2d5   :  { %289 = vsyncadd [#allocation5], 4294967280 }
 0x2d6   :  { %244 = vsyncpa [#allocation5], 1 }

</bundles_post_ra>
